<compile_context>
chip_gen: v7x
topology: tpu7x:2x2x1
jax: 0.10.0
libtpu: 0.0.40
codegen_flags: <defaults>
</compile_context>

<pallas_src>
import jax
import jax.numpy as jnp
from jax import lax
from jax.experimental import pallas as pl
from jax.experimental.pallas import tpu as pltpu

HIDDEN = 768  # module sets config.hidden_size = 768


# ----------------------------- Pallas kernel -------------------------------
def head_kernel(cls_ref, w_ref, b_ref, out_ref):
    """Fused L2-normalize + Linear(768 -> 1) on CLS features.

    cls_ref: (TILE_N, HIDDEN) f32 VMEM -- CLS rows (token 0 of each context image)
    w_ref:   (1, HIDDEN)      f32 VMEM -- prediction_layer weight row (grid-invariant)
    b_ref:   (1,)             f32 SMEM -- prediction_layer bias scalar
    out_ref: (TILE_N, 1)      f32 VMEM
    """
    x = cls_ref[...]                                     # (TILE_N, HIDDEN)
    w = w_ref[...]                                       # (1, HIDDEN), row broadcast
    # <x, w> and <x, x>: VPU elementwise mul + XLU row reduce. The 1-wide
    # projection never touches the MXU.
    dot = jnp.sum(x * w, axis=-1, keepdims=True)         # (TILE_N, 1)
    sq = jnp.sum(x * x, axis=-1, keepdims=True)          # (TILE_N, 1)
    # (x / ||x||) @ w.T + b  ==  <x, w> * rsqrt(<x, x>) + b ; rsqrt -> EUP slot.
    out_ref[...] = dot * lax.rsqrt(sq) + b_ref[0]


def _round_up(x, m):
    return ((x + m - 1) // m) * m


def contextual_blip_head(features, pred_w, pred_b, *, max_tile_n=1024):
    """features: (N, T, HIDDEN) f32 -> preds: (N, 1) f32."""
    n, t, h = features.shape
    assert h == HIDDEN
    # Free contiguous reshape: CLS token = columns [0, HIDDEN) of each row, so
    # the input BlockSpec performs the CLS slice as part of the HBM->VMEM DMA
    # (no materialized (N, 768) slice in the wrapper).
    feat2d = features.reshape(n, t * h)
    w = pred_w.reshape(1, HIDDEN)                        # (out, in) -> (1, HIDDEN)
    b = pred_b.reshape(1).astype(jnp.float32)
    tile_n = min(max_tile_n, _round_up(n, 8))            # f32 sublane alignment
    grid = (pl.cdiv(n, tile_n),)
    return pl.pallas_call(
        head_kernel,
        out_shape=jax.ShapeDtypeStruct((n, 1), jnp.float32),
        grid=grid,
        in_specs=[
            pl.BlockSpec((tile_n, HIDDEN), lambda i: (i, 0)),   # CLS rows only
            pl.BlockSpec((1, HIDDEN), lambda i: (0, 0)),        # invariant weight row
            pl.BlockSpec(memory_space=pltpu.MemorySpace.SMEM),  # bias scalar
        ],
        out_specs=pl.BlockSpec((tile_n, 1), lambda i: (i, 0)),
        compiler_params=pltpu.CompilerParams(
            dimension_semantics=("parallel",)),
    )(feat2d, w, b)


# ---------------------- deterministic BLIP stand-in ------------------------
def synthetic_blip_multimodal(images, text, params):
    """Deterministic stand-in for BLIP_Base(images, text, mode='multimodal').

    Produces multimodal features of shape (N, T, HIDDEN): token embeddings
    conditioned on a flattened image projection.
    """
    n = images.shape[0]
    img_flat = images.reshape(n, -1).astype(jnp.float32)          # (N, 3*H*W)
    img_feat = jnp.tanh(img_flat @ params["w_vis"])               # (N, HIDDEN)
    txt_emb = params["tok_emb"][text]                             # (N, T, HIDDEN)
    return txt_emb + img_feat[:, None, :]                         # (N, T, HIDDEN)


def contextual_blip_forward(images, text, pos_mask, params):
    # pos_mask is unused, matching the original (commented-out) forward path.
    del pos_mask
    features = synthetic_blip_multimodal(images, text, params)
    return contextual_blip_head(features, params["pred_w"], params["pred_b"])


# --------------------------------- main ------------------------------------
if __name__ == "__main__":
    key = jax.random.PRNGKey(0)
    k_img, k_txt, k_vis, k_emb, k_w, k_b = jax.random.split(key, 6)

    N, C, H, W = 10, 3, 16, 16      # 10-image context, NCHW like PyTorch
    T, VOCAB = 8, 32

    images = jax.random.normal(k_img, (N, C, H, W), dtype=jnp.float32)
    text = jax.random.randint(k_txt, (N, T), 0, VOCAB, dtype=jnp.int32)
    pos_mask = jnp.ones((N, 1), dtype=jnp.float32)

    params = {
        "w_vis": 0.02 * jax.random.normal(k_vis, (C * H * W, HIDDEN), jnp.float32),
        "tok_emb": 0.02 * jax.random.normal(k_emb, (VOCAB, HIDDEN), jnp.float32),
        # nn.Linear(768, 1): weight (out, in) = (1, 768), bias (1,)
        "pred_w": 0.02 * jax.random.normal(k_w, (1, HIDDEN), jnp.float32),
        "pred_b": 0.02 * jax.random.normal(k_b, (1,), jnp.float32),
    }

    preds = contextual_blip_forward(images, text, pos_mask, params)
    preds = jax.block_until_ready(preds)
    assert preds.shape == (N, 1), preds.shape

    # pure-JAX reference for the kernel-implemented portion (normalize -> linear)
    feats_ref = synthetic_blip_multimodal(images, text, params)
    cls_ref = feats_ref[:, 0, :]
    cls_ref = cls_ref / jnp.linalg.norm(cls_ref, axis=-1, keepdims=True)
    ref = cls_ref @ params["pred_w"].T + params["pred_b"]
    assert jnp.allclose(preds, ref, atol=1e-5, rtol=1e-5), (
        jnp.max(jnp.abs(preds - ref)))

    print("KERNEL_OK")
</pallas_src>

<mosaic_0001>
module attributes {stable_mosaic.version = 11 : i64} {
  func.func @head_kernel(%arg0: i32, %arg1: memref<16x768xf32, #tpu.memory_space<vmem>>, %arg2: memref<1x768xf32, #tpu.memory_space<vmem>>, %arg3: memref<1xf32, #tpu.memory_space<smem>>, %arg4: memref<16x1xf32, #tpu.memory_space<vmem>>) attributes {dimension_semantics = [#tpu.dimension_semantics<parallel>], iteration_bounds = array<i64: 1>, scalar_prefetch = 0 : i64, scratch_operands = 0 : i64, tpu.core_type = #tpu.core_type<tc>, window_params = [{transform_indices = @transform_0, window_bounds = array<i64: 16, 768>}, {pipeline_mode = #tpu.pipeline_mode<synchronous>, transform_indices = @transform_1, window_bounds = array<i64: 1, 768>}, {transform_indices = @transform_2, window_bounds = array<i64: 1>}, {transform_indices = @transform_3, window_bounds = array<i64: 16, 1>}]} {
    %c0 = arith.constant 0 : index
    %c0_0 = arith.constant 0 : index
    %0 = vector.load %arg1[%c0, %c0_0] : memref<16x768xf32, #tpu.memory_space<vmem>>, vector<16x768xf32>
    %c0_1 = arith.constant 0 : index
    %c0_2 = arith.constant 0 : index
    %1 = vector.load %arg2[%c0_1, %c0_2] : memref<1x768xf32, #tpu.memory_space<vmem>>, vector<1x768xf32>
    %2 = vector.broadcast %1 : vector<1x768xf32> to vector<16x768xf32>
    %3 = arith.mulf %0, %2 : vector<16x768xf32>
    %cst = arith.constant dense<0.000000e+00> : vector<16xf32>
    %4 = vector.multi_reduction <add>, %3, %cst [1] : vector<16x768xf32> to vector<16xf32>
    %5 = vector.shape_cast %4 : vector<16xf32> to vector<16x1xf32>
    %6 = arith.mulf %0, %0 : vector<16x768xf32>
    %cst_3 = arith.constant dense<0.000000e+00> : vector<16xf32>
    %7 = vector.multi_reduction <add>, %6, %cst_3 [1] : vector<16x768xf32> to vector<16xf32>
    %8 = vector.shape_cast %7 : vector<16xf32> to vector<16x1xf32>
    %9 = math.rsqrt %8 : vector<16x1xf32>
    %10 = arith.mulf %5, %9 : vector<16x1xf32>
    %c0_4 = arith.constant 0 : index
    %11 = memref.load %arg3[%c0_4] : memref<1xf32, #tpu.memory_space<smem>>
    %12 = vector.broadcast %11 : f32 to vector<16x1xf32>
    %13 = arith.addf %10, %12 : vector<16x1xf32>
    %c0_5 = arith.constant 0 : index
    %c0_6 = arith.constant 0 : index
    %14 = vector.load %arg4[%c0_5, %c0_6] : memref<16x1xf32, #tpu.memory_space<vmem>>, vector<16x1xf32>
    tpu.vector_store %arg4[%c0_5, %c0_6], %13 {strides = array<i32>} : memref<16x1xf32, #tpu.memory_space<vmem>>, vector<16x1xf32>,
    return
  }
  func.func @transform_0(%arg0: i32) -> (i32, i32) {
    %c0_i32 = arith.constant 0 : i32
    %c0_i32_0 = arith.constant 0 : i32
    return %arg0, %c0_i32 : i32, i32
  }
  func.func @transform_1(%arg0: i32) -> (i32, i32) {
    %c0_i32 = arith.constant 0 : i32
    %c0_i32_0 = arith.constant 0 : i32
    %c0_i32_1 = arith.constant 0 : i32
    return %c0_i32, %c0_i32_0 : i32, i32
  }
  func.func @transform_2(%arg0: i32) -> i32 {
    %c0_i32 = arith.constant 0 : i32
    %c0_i32_0 = arith.constant 0 : i32
    return %c0_i32 : i32
  }
  func.func @transform_3(%arg0: i32) -> (i32, i32) {
    %c0_i32 = arith.constant 0 : i32
    %c0_i32_0 = arith.constant 0 : i32
    return %arg0, %c0_i32 : i32, i32
  }
}

</mosaic_0001>

<bundles_post_ra>
// kernel: tpu_custom_call.1
= control target key start
LH: loop header
LB: loop body
LE: loop exit
PB: predicated region body
PF: predicated region fallthrough
CT: control target
= control target key end

     0   :  { %9 = vsyncpa [#allocation4], 0  ;;  %s173_s12 = smov [#allocation3]   ;;  %s224_s0 = inlined_call_operand.hbm [shape: f32[10,6144], index: 0, kind: input, shape index: {}]   ;;  %s225_s1 = inlined_call_operand.vmem [shape: f32[1,768], index: 1, kind: input, shape index: {}]   ;;  %s226_s2 = inlined_call_operand.<no memory space> [shape: f32[1], index: 2, kind: input, shape index: {}]   ;;  %s227_s3 = inlined_call_operand.vmem [shape: f32[10,1], index: 3, kind: output, shape index: {}]  }
   0x1   :  { %s15_s13 = sshll.u32 %s173_s12, 4  ;;  %s149_s16 = scalar_lea.hbm %s224_s0, 1536  ;;  %s16_s13 = int_to_ptr.vmem [resolvable:$true] %s15_s13 }
   0x2   :  { %p150_p0 = scmp.ne.s32.totalorder %s224_s0, %s149_s16  ;;  %s151_s21 = scalar_lea.hbm %s224_s0, 12288 }
   0x3   :  { %p152_p1 = scmp.lt.u32.totalorder %s151_s21, %s149_s16  ;;  %p153_p2 = scmp.lt.u32.totalorder %s149_s16, %s224_s0 }
   0x5   :  { %p154_p3 = por %p153_p2, %p152_p1 }
   0x7   :  { %p155_p4 = pnand %p154_p3, %p150_p0 }
   0x9   :  { %158 = shalt.err (!%p155_p4)
}
   0xa   :  { %s159_s24 = scalar_lea.vmem %s16_s13, 1536  ;;  %p164_p6 = scmp.lt.s32.totalorder %s16_s13, %s16_s13 }
   0xb   :  { %p160_p5 = scmp.ne.s32.totalorder %s16_s13, %s159_s24  ;;  %p165_p7 = scmp.lt.s32.totalorder %s159_s24, %s159_s24 }
   0xd   :  { %p166_p8 = por %p165_p7, %p164_p6 }
   0xf   :  { %p167_p9 = pnand %p166_p8, %p160_p5 }
  0x11   :  { %170 = shalt.err (!%p167_p9)
}
  0x12   :  { %s174_s25 = smov 6144   ;;  %s175_s26 = smov 768  }
  0x13   :  { %s176_s27 = smov 48  }
  0x14   :  { %21 = dma.hbm_to_vmem [thread:$0]  %s224_s0, 1536, %s16_s13, [#allocation4], %s174_s25, %s175_s26, %s176_s27  }
  0x15   :  { %171 = dma.done.wait [#allocation4], 1536  }
  0x16   :  { %172 = vsyncadd [#allocation4], 4294965760  ;;  %v43_v0 = vlaneseq  ;;  %v29_v2 = vld [vmem:[#allocation3] sm:$0xff]  ;;  %v30_v3 = vld [vmem:[#allocation3 + $0x8] sm:$0xff]  ;;  %vm133_vm0 = vcmask 7168  }
  0x17   :  { %v31_v4 = vld [vmem:[#allocation3 + $0x10] sm:$0xff]  ;;  %v32_v6 = vld [vmem:[#allocation3 + $0x18] sm:$0xff]  ;;  %v33_v7 = vld [vmem:[#allocation3 + $0x20] sm:$0xff]  ;;  %v99_v9 = vmul.f32 %v29_v2, %v29_v2  ;;  %v100_v10 = vmul.f32 %v30_v3, %v30_v3 }
  0x18   :  { %v44_v1 = vshrl.u32 %v43_v0, 7  ;;  %v34_v8 = vld [vmem:[#allocation3 + $0x28] sm:$0xff]  ;;  %v101_v11 = vmul.f32 %v31_v4, %v31_v4  ;;  %v102_v13 = vmul.f32 %v32_v6, %v32_v6  ;;  %v35_v14 = vld [vmem:[#allocation3 + $0x30] sm:$0xff]  ;;  %v36_v15 = vld [vmem:[#allocation3 + $0x38] sm:$0xff]  ;;  %v103_v26 = vmul.f32 %v33_v7, %v33_v7 }
  0x19   :  { %v37_v16 = vld [vmem:[#allocation3 + $0x40] sm:$0xff]  ;;  %v111_v20 = vadd.f32 %v100_v10, %v99_v9  ;;  %v38_v21 = vld [vmem:[#allocation3 + $0x48] sm:$0xff]  ;;  %v39_v22 = vld [vmem:[#allocation3 + $0x50] sm:$0xff]  ;;  %v105_v23 = vmul.f32 %v35_v14, %v35_v14  ;;  %v106_v24 = vmul.f32 %v36_v15, %v36_v15  ;;  %v104_v27 = vmul.f32 %v34_v8, %v34_v8 }
  0x1a   :  { %v45_v5 = vsub.s32 0, %v44_v1  ;;  %v49_v12 = vsub.s32 1, %v44_v1  ;;  %v53_v17 = vsub.s32 2, %v44_v1  ;;  %v57_v18 = vsub.s32 3, %v44_v1  ;;  %v41_v29 = vld [vmem:[%s225_s1] sm:$0x3f] }
  0x1b   :  { %v61_v19 = vsub.s32 4, %v44_v1  ;;  %v107_v25 = vmul.f32 %v37_v16, %v37_v16  ;;  %v108_v28 = vmul.f32 %v38_v21, %v38_v21  ;;  %v65_v30 = vsub.s32 5, %v44_v1  ;;  %v40_v32 = vld [vmem:[#allocation3 + $0x58] sm:$0xff] }
  0x1c   :  { %v112_v31 = vadd.f32 %v111_v20, %v101_v11  ;;  %v118_v33 = vadd.f32 %v106_v24, %v105_v23  ;;  %v46_v34 = vrot.slane %v41_v29, %v45_v5  ;;  %v50_v35 = vrot.slane %v41_v29, %v49_v12 }
  0x1d   :  { %v109_v36 = vmul.f32 %v39_v22, %v39_v22  ;;  %v54_v37 = vrot.slane %v41_v29, %v53_v17  ;;  %v58_v38 = vrot.slane %v41_v29, %v57_v18  ;;  %v62_v39 = vrot.slane %v41_v29, %v61_v19 }
  0x1e   :  { %v113_v40 = vadd.f32 %v112_v31, %v102_v13  ;;  %v119_v41 = vadd.f32 %v118_v33, %v107_v25  ;;  %v73_v42 = vmul.f32 %v46_v34, %v29_v2  ;;  %v74_v43 = vmul.f32 %v50_v35, %v30_v3 }
  0x1f   :  { %v110_v44 = vmul.f32 %v40_v32, %v40_v32  ;;  %v66_v45 = vrot.slane %v41_v29, %v65_v30  ;;  %v75_v46 = vmul.f32 %v54_v37, %v31_v4  ;;  %v76_v47 = vmul.f32 %v58_v38, %v32_v6 }
  0x20   :  { %v114_v48 = vadd.f32 %v113_v40, %v103_v26  ;;  %v120_v49 = vadd.f32 %v119_v41, %v108_v28  ;;  %v85_v50 = vadd.f32 %v74_v43, %v73_v42  ;;  %v79_v51 = vmul.f32 %v46_v34, %v35_v14 }
  0x21   :  { %v80_v52 = vmul.f32 %v50_v35, %v36_v15  ;;  %v81_v53 = vmul.f32 %v54_v37, %v37_v16  ;;  %v77_v56 = vmul.f32 %v62_v39, %v33_v7  ;;  %v82_v58 = vmul.f32 %v58_v38, %v38_v21 }
  0x22   :  { %v115_v54 = vadd.f32 %v114_v48, %v104_v27  ;;  %v121_v55 = vadd.f32 %v120_v49, %v109_v36  ;;  %v86_v57 = vadd.f32 %v85_v50, %v75_v46  ;;  %v78_v61 = vmul.f32 %v66_v45, %v34_v8 }
  0x23   :  { %v92_v59 = vadd.f32 %v80_v52, %v79_v51  ;;  %v83_v63 = vmul.f32 %v62_v39, %v39_v22  ;;  %v84_v2 = vmul.f32 %v66_v45, %v40_v32  ;;  %v130_v8 = vstv %s226_s2 }
  0x24   :  { %116 = vadd.xlane.f32.xlu0 %v115_v54  ;;  %v122_v60 = vadd.f32 %v121_v55, %v110_v44  ;;  %v87_v62 = vadd.f32 %v86_v57, %v76_v47 }
  0x25   :  { %v93_v0 = vadd.f32 %v92_v59, %v81_v53 }
  0x26   :  { %v88_v1 = vadd.f32 %v87_v62, %v77_v56 }
  0x27   :  { %v94_v3 = vadd.f32 %v93_v0, %v82_v58 }
  0x28   :  { %123 = vadd.xlane.f32.xlu0 %v122_v60  ;;  %v89_v4 = vadd.f32 %v88_v1, %v78_v61 }
  0x29   :  { %v95_v5 = vadd.f32 %v94_v3, %v83_v63 }
  0x2a   :  { %90 = vadd.xlane.f32.xlu1 %v89_v4 }
  0x2b   :  { %v96_v6 = vadd.f32 %v95_v5, %v84_v2 }
  0x2e   :  { %97 = vadd.xlane.f32.xlu1 %v96_v6 }
  0xb1   :  { %v117_v9 = vpop.xlane.xlu0 %116 }
  0xb2   :  { %145 = vrsqrt.f32 %v117_v9 }
  0xb5   :  { %v124_v7 = vpop.xlane.xlu0 %123 }
  0xb6   :  { %147 = vrsqrt.f32 %v124_v7 }
  0xb7   :  { %v91_v10 = vpop.xlane.xlu1 %90 }
  0xbb   :  { %v98_v13 = vpop.xlane.xlu1 %97 }
  0xbc   :  { %v146_v11 = vpop.eup %145 }
  0xbd   :  { %v127_v12 = vmul.f32 %v146_v11, %v91_v10 }
  0xbf   :  { %v131_v14 = vadd.f32 %v130_v8, %v127_v12 }
  0xc0   :  { %v148_v15 = vpop.eup %147 }
  0xc1   :  { %134 = vst.msk [vmem:[%s227_s3] sm:$0xff] %vm133_vm0, %v131_v14  ;;  %v128_v16 = vmul.f32 %v148_v15, %v98_v13 }
  0xc3   :  { %v132_v17 = vadd.f32 %v130_v8, %v128_v16 }
  0xc5   :  { %135 = vst.msk [vmem:[%s227_s3 + $0x8] sm:$0xff] %vm133_vm0, %v132_v17 }
  0xc6   :  { %140 = vsyncpa [#allocation4], 1 }

</bundles_post_ra>
